<compile_context>
chip_gen: v7x
topology: tpu7x:2x2x1
jax: 0.10.0
libtpu: 0.0.40
codegen_flags: <defaults>
</compile_context>

<pallas_src>
import numpy as np
import jax
import jax.numpy as jnp
from jax.experimental import pallas as pl
from jax.experimental.pallas import tpu as pltpu


def _cdiv(a, b):
    return -(-a // b)


def _round_up(a, b):
    return _cdiv(a, b) * b


def _min_sublane(dtype):
    # second-minor tiling requirement per itemsize: f32 -> 8, bf16 -> 16, i8 -> 32
    return {4: 8, 2: 16, 1: 32}.get(np.dtype(dtype).itemsize, 8)


def _make_focal_kernel(gamma, chunk, steps, nblocks, rows, need_skip, has_partial):
    gamma = float(gamma)
    gamma_is_small_int = gamma.is_integer() and 0.0 <= gamma <= 8.0
    gamma_int = int(gamma) if gamma_is_small_int else None

    def modulator(one_minus_pt):
        # (1 - pt) ** gamma. Integer gamma -> repeated multiply (VPU, spare
        # slots); only non-integer gamma pays for the EUP log/exp pow.
        if gamma_is_small_int:
            if gamma_int == 0:
                return jnp.ones_like(one_minus_pt)
            r = one_minus_pt
            for _ in range(gamma_int - 1):
                r = r * one_minus_pt
            return r
        return one_minus_pt ** jnp.float32(gamma)

    def focal_kernel(w_ref, p_ref, t_ref, o_ref):
        part = pl.program_id(0)   # 'parallel' axis (megacore split)
        i = pl.program_id(1)      # 'arbitrary' reduction axis

        @pl.when(i == 0)
        def _():
            o_ref[...] = jnp.zeros_like(o_ref)

        def accumulate():
            x = p_ref[...].astype(jnp.float32)   # (chunk, 128) logits
            z = t_ref[...].astype(jnp.float32)   # (chunk, 128) targets
            w = w_ref[...].astype(jnp.float32)   # (1, 128) per-lane class weights

            # Numerically stable BCE-with-logits (reduction='none'):
            #   max(x, 0) - x*z + log1p(exp(-|x|))
            bce = jnp.maximum(x, 0.0) - x * z + jnp.log1p(jnp.exp(-jnp.abs(x)))
            pt = jnp.exp(-bce)
            focal = w * modulator(1.0 - pt) * bce

            if has_partial:
                # Only the very last block is partial; the mask is a row-index
                # compare against a scalar limit (>= chunk for all full blocks,
                # so it is a no-op there).  ~3 VPU ops per (8,128) vreg.
                blk = part * steps + i
                limit = rows - blk * chunk
                rid = jax.lax.broadcasted_iota(jnp.int32, (chunk, 128), 0)
                focal = jnp.where(rid < limit, focal, 0.0)

            # Per-lane accumulation: collapse row-groups of 8 with plain vreg
            # adds (VPU only); the cross-lane reduce happens once, outside.
            o_ref[...] += jnp.sum(focal.reshape(chunk // 8, 8, 128), axis=0)

        if need_skip:
            # Uneven block split across the two megacore parts: skip the
            # (clamped, re-used) trailing block(s) of the last part.
            pl.when(part * steps + i < nblocks)(accumulate)
        else:
            accumulate()

    return focal_kernel


def focal_loss_pallas(preds, targets, class_weights, gamma=2.0, tile_rows=2048):
    """Mean class-balanced focal loss over logits (matches FocalLoss.forward)."""
    assert preds.shape == targets.shape and preds.ndim == 2
    N, C = preds.shape
    assert 128 % C == 0, "lane-dense path requires num_classes to divide 128"
    # TODO(synk): general C (128 % C != 0) would need a per-row weight pattern.

    total = N * C
    reps = 128 // C
    w_flat = class_weights.astype(jnp.float32).reshape(C)
    w_row = jnp.tile(w_flat, (reps,)).reshape(1, 128)

    rows = total // 128
    rem = total - rows * 128            # < 128 elements, always a multiple of C

    # ---- tiny tail (< 128 elements) in plain JAX: avoids padding/copying the
    # ---- full tensors and any per-step masking in the kernel.
    tail_sum = jnp.float32(0.0)
    if rem:
        xt = preds.reshape(-1)[rows * 128:].astype(jnp.float32)
        zt = targets.reshape(-1)[rows * 128:].astype(jnp.float32)
        wt = jnp.tile(w_flat, (rem // C,))
        bce_t = jnp.maximum(xt, 0.0) - xt * zt + jnp.log1p(jnp.exp(-jnp.abs(xt)))
        pt_t = jnp.exp(-bce_t)
        tail_sum = jnp.sum(wt * (1.0 - pt_t) ** jnp.float32(gamma) * bce_t)

    if rows == 0:
        return tail_sum / jnp.float32(total)

    # ---- lane-dense (rows, 128) main view.
    if rem:
        # TODO(synk): when total % 128 != 0 the prefix slice below still
        # materializes one copy of the main part at the XLA level; zero-copy
        # would need a raw-HBM (pl.ANY) path with 1D->2D manual DMA.
        p2 = preds.reshape(-1)[: rows * 128].reshape(rows, 128)
        t2 = targets.reshape(-1)[: rows * 128].reshape(rows, 128)
    else:
        # Free bitcast reshape - no HBM copy at all.
        p2 = preds.reshape(rows, 128)
        t2 = targets.reshape(rows, 128)

    # ---- tiling / megacore split.
    g = max(_min_sublane(preds.dtype), _min_sublane(targets.dtype))
    tr = _round_up(max(8, min(int(tile_rows), 8192)), g)

    chunk2 = min(tr, _round_up(_cdiv(rows, 2), g))
    if _cdiv(rows, chunk2) >= 2:
        num_parts, chunk = 2, chunk2            # both TensorCores get work
    else:
        num_parts, chunk = 1, min(tr, _round_up(rows, g))
    nblocks = _cdiv(rows, chunk)
    steps = _cdiv(nblocks, num_parts)
    need_skip = num_parts * steps > nblocks     # uneven split: skip extra steps
    has_partial = (rows % chunk) != 0           # only the last block is partial

    kernel = _make_focal_kernel(float(gamma), chunk, steps, nblocks, rows,
                                need_skip, has_partial)

    if need_skip:
        def in_idx(p, i):
            return (jnp.minimum(p * steps + i, nblocks - 1), 0)
    else:
        def in_idx(p, i):
            return (p * steps + i, 0)

    # Raise the scoped-VMEM cap only when big tiles need it (safe on all gens).
    est_vmem = (2 * chunk * 128 * (preds.dtype.itemsize + targets.dtype.itemsize)
                + 8 * chunk * 128 * 4 + (1 << 20))
    cp_kwargs = dict(dimension_semantics=("parallel", "arbitrary"))
    if est_vmem > 12 * (1 << 20):
        cp_kwargs["vmem_limit_bytes"] = int(min(max(est_vmem, 32 * (1 << 20)),
                                                56 * (1 << 20)))

    out = pl.pallas_call(
        kernel,
        out_shape=jax.ShapeDtypeStruct((num_parts * 8, 128), jnp.float32),
        grid_spec=pltpu.PrefetchScalarGridSpec(
            num_scalar_prefetch=0,
            grid=(num_parts, steps),
            in_specs=[
                pl.BlockSpec((1, 128), lambda p, i: (0, 0)),     # class weights
                pl.BlockSpec((chunk, 128), in_idx),              # preds (lane-dense)
                pl.BlockSpec((chunk, 128), in_idx),              # targets
            ],
            out_specs=pl.BlockSpec((8, 128), lambda p, i: (p, 0)),
        ),
        compiler_params=pltpu.CompilerParams(**cp_kwargs),
    )(w_row, p2, t2)

    # Tiny final cross-lane reduce + mean, done once outside the kernel.
    return (jnp.sum(out) + tail_sum) / jnp.float32(total)


def make_class_weights(class_counts, beta=0.999):
    class_counts = np.asarray(class_counts, dtype=np.float64)
    effective_num = 1.0 - np.power(beta, class_counts)
    w = (1.0 - beta) / effective_num
    w = w / w.sum() * len(class_counts)
    return jnp.asarray(w, dtype=jnp.float32)


def focal_loss_ref(preds, targets, class_weights, gamma=2.0):
    x = preds.astype(jnp.float32)
    z = targets.astype(jnp.float32)
    bce = jnp.maximum(x, 0.0) - x * z + jnp.log1p(jnp.exp(-jnp.abs(x)))
    pt = jnp.exp(-bce)
    focal = class_weights[None, :].astype(jnp.float32) * (1.0 - pt) ** gamma * bce
    return jnp.mean(focal)


def _check(preds, targets, class_weights, gamma, **kw):
    loss = jax.block_until_ready(
        focal_loss_pallas(preds, targets, class_weights, gamma=gamma, **kw))
    ref = focal_loss_ref(preds, targets, class_weights, gamma=gamma)
    np.testing.assert_allclose(np.asarray(loss), np.asarray(ref),
                               rtol=2e-5, atol=1e-6)


if __name__ == "__main__":
    class_counts = [100, 200, 50, 25]            # C = 4 classes
    gamma, beta = 2.0, 0.999
    class_weights = make_class_weights(class_counts, beta)
    C = len(class_counts)

    key = jax.random.PRNGKey(0)
    ks = jax.random.split(key, 10)

    # 1) Zero-copy path, megacore split, exact blocks (N*C = 2048 = 16 rows).
    N = 512
    p = jax.random.normal(ks[0], (N, C), dtype=jnp.float32)
    t = jax.random.bernoulli(ks[1], 0.5, (N, C)).astype(jnp.float32)
    _check(p, t, class_weights, gamma)

    # 2) Partial last block (gated row mask) + <128-element JAX tail.
    N = 2500                                      # 10000 elems: 78 rows + 16 tail
    p = jax.random.normal(ks[2], (N, C), dtype=jnp.float32)
    t = jax.random.bernoulli(ks[3], 0.5, (N, C)).astype(jnp.float32)
    _check(p, t, class_weights, gamma)

    # 3) Uneven megacore split (odd block count -> clamped/skipped step).
    N = 2048                                      # 64 rows, chunk=24 -> 3 blocks
    p = jax.random.normal(ks[4], (N, C), dtype=jnp.float32)
    t = jax.random.bernoulli(ks[5], 0.5, (N, C)).astype(jnp.float32)
    _check(p, t, class_weights, gamma, tile_rows=24)

    # 4) Narrow HBM dtype (bf16 logits/targets, f32 compute in-kernel).
    N = 512
    p = jax.random.normal(ks[6], (N, C), dtype=jnp.bfloat16)
    t = jax.random.bernoulli(ks[7], 0.5, (N, C)).astype(jnp.bfloat16)
    _check(p, t, class_weights, gamma)

    # 5) Tail-only tiny shape (N*C < 128 -> pure JAX path).
    N = 16
    p = jax.random.normal(ks[8], (N, C), dtype=jnp.float32)
    t = jax.random.bernoulli(ks[9], 0.5, (N, C)).astype(jnp.float32)
    _check(p, t, class_weights, gamma)

    print("KERNEL_OK")
</pallas_src>

<mosaic_0001>
module attributes {stable_mosaic.version = 11 : i64} {
  func.func @focal_kernel(%arg0: i32, %arg1: i32, %arg2: memref<1x128xf32, #tpu.memory_space<vmem>>, %arg3: memref<8x128xf32, #tpu.memory_space<vmem>>, %arg4: memref<8x128xf32, #tpu.memory_space<vmem>>, %arg5: memref<8x128xf32, #tpu.memory_space<vmem>>) attributes {dimension_semantics = [#tpu.dimension_semantics<parallel>, #tpu.dimension_semantics<arbitrary>], iteration_bounds = array<i64: 2, 1>, scalar_prefetch = 0 : i64, scratch_operands = 0 : i64, tpu.core_type = #tpu.core_type<tc>, window_params = [{pipeline_mode = #tpu.pipeline_mode<synchronous>, transform_indices = @transform_0, window_bounds = array<i64: 1, 128>}, {transform_indices = @transform_1, window_bounds = array<i64: 8, 128>}, {transform_indices = @transform_2, window_bounds = array<i64: 8, 128>}, {transform_indices = @transform_3, window_bounds = array<i64: 8, 128>}]} {
    %c0_i32 = arith.constant 0 : i32
    %0 = arith.cmpi eq, %arg1, %c0_i32 : i32
    %1 = arith.extui %0 : i1 to i32
    %c0_i32_0 = arith.constant 0 : i32
    %2 = arith.cmpi ne, %1, %c0_i32_0 : i32
    scf.if %2 {
      %cst_14 = arith.constant 0.000000e+00 : f32
      %30 = vector.broadcast %cst_14 : f32 to vector<8x128xf32>
      %c0_15 = arith.constant 0 : index
      %c0_16 = arith.constant 0 : index
      %31 = vector.load %arg5[%c0_15, %c0_16] : memref<8x128xf32, #tpu.memory_space<vmem>>, vector<8x128xf32>
      tpu.vector_store %arg5[%c0_15, %c0_16], %30 {strides = array<i32>} : memref<8x128xf32, #tpu.memory_space<vmem>>, vector<8x128xf32>,
    } else {
    }
    %c0 = arith.constant 0 : index
    %c0_1 = arith.constant 0 : index
    %3 = vector.load %arg3[%c0, %c0_1] : memref<8x128xf32, #tpu.memory_space<vmem>>, vector<8x128xf32>
    %c0_2 = arith.constant 0 : index
    %c0_3 = arith.constant 0 : index
    %4 = vector.load %arg4[%c0_2, %c0_3] : memref<8x128xf32, #tpu.memory_space<vmem>>, vector<8x128xf32>
    %c0_4 = arith.constant 0 : index
    %c0_5 = arith.constant 0 : index
    %5 = vector.load %arg2[%c0_4, %c0_5] : memref<1x128xf32, #tpu.memory_space<vmem>>, vector<1x128xf32>
    %cst = arith.constant 0.000000e+00 : f32
    %6 = vector.broadcast %cst : f32 to vector<8x128xf32>
    %7 = arith.maximumf %3, %6 : vector<8x128xf32>
    %8 = arith.mulf %3, %4 : vector<8x128xf32>
    %9 = arith.subf %7, %8 : vector<8x128xf32>
    %10 = math.absf %3 : vector<8x128xf32>
    %cst_6 = arith.constant 0.000000e+00 : f32
    %11 = vector.broadcast %cst_6 : f32 to vector<8x128xf32>
    %12 = arith.subf %11, %10 : vector<8x128xf32>
    %13 = math.exp %12 : vector<8x128xf32>
    %14 = math.log1p %13 : vector<8x128xf32>
    %15 = arith.addf %9, %14 : vector<8x128xf32>
    %cst_7 = arith.constant 0.000000e+00 : f32
    %16 = vector.broadcast %cst_7 : f32 to vector<8x128xf32>
    %17 = arith.subf %16, %15 : vector<8x128xf32>
    %18 = math.exp %17 : vector<8x128xf32>
    %cst_8 = arith.constant 1.000000e+00 : f32
    %19 = vector.broadcast %cst_8 : f32 to vector<8x128xf32>
    %20 = arith.subf %19, %18 : vector<8x128xf32>
    %21 = arith.mulf %20, %20 : vector<8x128xf32>
    %22 = vector.broadcast %5 : vector<1x128xf32> to vector<8x128xf32>
    %23 = arith.mulf %22, %21 : vector<8x128xf32>
    %24 = arith.mulf %23, %15 : vector<8x128xf32>
    %c0_9 = arith.constant 0 : index
    %c0_10 = arith.constant 0 : index
    %25 = vector.load %arg5[%c0_9, %c0_10] : memref<8x128xf32, #tpu.memory_space<vmem>>, vector<8x128xf32>
    %26 = vector.shape_cast %24 : vector<8x128xf32> to vector<1x8x128xf32>
    %cst_11 = arith.constant dense<0.000000e+00> : vector<8x128xf32>
    %27 = vector.multi_reduction <add>, %26, %cst_11 [0] : vector<1x8x128xf32> to vector<8x128xf32>
    %28 = arith.addf %25, %27 : vector<8x128xf32>
    %c0_12 = arith.constant 0 : index
    %c0_13 = arith.constant 0 : index
    %29 = vector.load %arg5[%c0_12, %c0_13] : memref<8x128xf32, #tpu.memory_space<vmem>>, vector<8x128xf32>
    tpu.vector_store %arg5[%c0_12, %c0_13], %28 {strides = array<i32>} : memref<8x128xf32, #tpu.memory_space<vmem>>, vector<8x128xf32>,
    return
  }
  func.func @transform_0(%arg0: i32, %arg1: i32) -> (i32, i32) {
    %c0_i32 = arith.constant 0 : i32
    %c0_i32_0 = arith.constant 0 : i32
    %c0_i32_1 = arith.constant 0 : i32
    return %c0_i32, %c0_i32_0 : i32, i32
  }
  func.func @transform_1(%arg0: i32, %arg1: i32) -> (i32, i32) {
    %c1_i32 = arith.constant 1 : i32
    %0 = arith.muli %arg0, %c1_i32 : i32
    %1 = arith.addi %0, %arg1 : i32
    %c0_i32 = arith.constant 0 : i32
    %c0_i32_0 = arith.constant 0 : i32
    return %1, %c0_i32 : i32, i32
  }
  func.func @transform_2(%arg0: i32, %arg1: i32) -> (i32, i32) {
    %c1_i32 = arith.constant 1 : i32
    %0 = arith.muli %arg0, %c1_i32 : i32
    %1 = arith.addi %0, %arg1 : i32
    %c0_i32 = arith.constant 0 : i32
    %c0_i32_0 = arith.constant 0 : i32
    return %1, %c0_i32 : i32, i32
  }
  func.func @transform_3(%arg0: i32, %arg1: i32) -> (i32, i32) {
    %c0_i32 = arith.constant 0 : i32
    %c0_i32_0 = arith.constant 0 : i32
    return %arg0, %c0_i32 : i32, i32
  }
}

</mosaic_0001>

<bundles_post_ra>
// kernel: tpu_custom_call.1
= control target key start
LH: loop header
LB: loop body
LE: loop exit
PB: predicated region body
PF: predicated region fallthrough
CT: control target
= control target key end

     0   :  { %8 = vsyncpa [#allocation3], 0  ;;  %s981_s0 = inlined_call_operand.hbm [shape: f32[1,128], index: 0, kind: input, shape index: {}]   ;;  %s982_s1 = inlined_call_operand.hbm [shape: f32[16,128], index: 1, kind: input, shape index: {}]   ;;  %s983_s2 = inlined_call_operand.hbm [shape: f32[16,128], index: 2, kind: input, shape index: {}]   ;;  %s984_s3 = inlined_call_operand.hbm [shape: f32[16,128], index: 3, kind: output, shape index: {}]  }
   0x1   :  { %9 = vsyncpa [#allocation6], 0 }
   0x2   :  { %11 = vsyncpa [#allocation6 + $0x1], 0 }
   0x3   :  { %12 = vsyncpa [#allocation4], 0 }
   0x4   :  { %14 = vsyncpa [#allocation4 + $0x1], 0  ;;  %s725_s12 = smov 0   ;;  %s727_s13 = smov 0  }
   0x5   :  { %s729_s14 = smov 0   ;;  %s731_s15 = smov 0  }
   0x6   :  { %s733_s16 = smov 0   ;;  %s735_s17 = smov 0  }
   0x7 LB: > { %s32_s18 = sadd.s32 1, %s695_s16  ;;  %s62_s19 = sadd.s32 1, %s687_s14  ;;  %s699_s17 = sphi %s735_s17, %s20_s17   ;;  %s695_s16 = sphi %s733_s16, %s1010_s16   ;;  %s691_s15 = sphi %s731_s15, %s1009_s15   ;;  %s687_s14 = sphi %s729_s14, %s1008_s14   ;;  %s683_s13 = sphi %s727_s13, %s1007_s13   ;;  %s679_s12 = sphi %s725_s12, %s1006_s12  }
   0x8   : > { %p34_p0 = scmp.ge.s32.totalorder %s32_s18, 2  ;;  %p69_p1 = scmp.ne.s32.totalorder %s687_s14, %s683_s13 }
   0x9   : > { %p70_p2 = scmp.eq.s32.totalorder %s699_s17, 0  ;;  %p466_p5 = scmp.lt.s32.totalorder %s699_s17, 2 }
   0xa   : > { %s1012_s18 = smov (%p34_p0, %s32_s18), 0  ;;  %s164_s21 = sand.u32 1, %s699_s17  }
   0xb   : > { %p71_p4 = por %p70_p2, %p69_p1  ;;  %s59_s20 = ssub.s32 %s695_s16, %s1012_s18 }
   0xc   : > { %p60_p6 = scmp.eq.s32.totalorder %s59_s20, 0  ;;  %s166_s22 = sand.u32 1, %s687_s14  }
   0xd   : > { %s427_s23 = sshll.u32 %s695_s16, 7  ;;  %s775_s25 = sshll.u32 %s166_s22, 3 }
   0xe   : > { %s773_s24 = scalar_select %p60_p6, %s687_s14, %s62_s19  }
   0xf   : > { %s782_s28 = scalar_lea.hbm %s982_s1, %s427_s23  ;;  %p784_p7 = pnand %p466_p5, %p71_p4 }
  0x10   : > { %s168_s30 = scalar_lea.vmem [#allocation5], %s775_s25  ;;  %s791_s5 = scalar_lea.sflag [#allocation6], %s164_s21 }
  0x11   : > { %s176_s4 = sshll.u32 %s168_s30, 4  ;;  %s525_s6 = scalar_lea.hbm %s782_s28, 128  ;;  %s789_s4 = int_to_ptr.vmem [resolvable:$true] %s176_s4 }
  0x12   : > { %p526_p8 = scmp.ne.s32.totalorder %s782_s28, %s525_s6  ;;  %p527_p9 = pneg %p784_p7 }
  0x13   : > { %s530_s9 = scalar_lea.hbm %s982_s1, 256  ;;  %p531_p12 = scmp.lt.u32.totalorder %s782_s28, %s982_s1 }
  0x14   : > { %p528_p10 = pnand %p527_p9, %p526_p8  ;;  %p532_p13 = scmp.lt.u32.totalorder %s530_s9, %s525_s6 }
  0x15   : > { %p534_p2 = scmp.lt.u32.totalorder %s525_s6, %s782_s28 }
  0x16   : > { %p529_p11 = pneg %p528_p10  ;;  %p533_p0 = por %p532_p13, %p531_p12 }
  0x18   : > { %p535_p4 = por %p534_p2, %p533_p0 }
  0x1a   : > { %p536_p5 = pnand %p535_p4, %p529_p11 }
  0x1c   : > { %539 = shalt.err (!%p536_p5)
}
  0x1d   : > { %s540_s19 = scalar_lea.vmem %s789_s4, 128  ;;  %s701_s20 = smov [#allocation5]  }
  0x1e   : > { %p541_p6 = scmp.ne.s32.totalorder %s789_s4, %s540_s19  ;;  %s545_s21 = sshll.u32 %s701_s20, 4  ;;  %s546_s21 = int_to_ptr.vmem [resolvable:$false] %s545_s21 }
  0x1f   : > { %s547_s22 = scalar_lea.vmem %s546_s21, 256  ;;  %p548_p3 = scmp.lt.s32.totalorder %s789_s4, %s546_s21 }
  0x20   : > { %p543_p8 = pnand %p541_p6, %p527_p9  ;;  %p549_p12 = scmp.lt.s32.totalorder %s547_s22, %s540_s19 }
  0x22   : > { %p544_p10 = pneg %p543_p8  ;;  %p550_p13 = por %p549_p12, %p548_p3 }
  0x24   : > { %p551_p0 = pnand %p550_p13, %p544_p10 }
  0x26   : > { %554 = shalt.err (!%p551_p0)
}
  0x27   : > { %457 = dma.hbm_to_vmem [thread:$0]  (!%p784_p7), %s782_s28, 128, %s789_s4, %s791_s5  }
  0x28   : > { %s820_s26 = sadd.s32 4294967295, %s699_s17   ;;  %s422_s27 = sadd.s32 4294967294, %s699_s17  }
  0x29   : > { %p75_p3 = scmp.ne.s32.totalorder %s683_s13, %s679_s12  ;;  %p985_p11 = scmp.eq.s32.totalorder %s820_s26, 0 }
  0x2a   : > { %p127_p2 = scmp.eq.s32.totalorder %s820_s26, 1  ;;  %p133_p4 = scmp.eq.s32.totalorder %s422_s27, 1 }
  0x2b   : > { %p423_p5 = scmp.ge.s32.totalorder %s699_s17, 1  ;;  %p830_p6 = por %p985_p11, %p75_p3 }
  0x2c   : > { %p837_p8 = por %p127_p2, %p69_p1  ;;  %p841_p10 = por %p133_p4, %p75_p3 }
  0x2d   : > { %s991_s30 = scalar_select %p830_p6, 1, 0 }
  0x2e   : > { %s992_s28 = scalar_select %p837_p8, 1, 0 }
  0x2f   : > { %s993_s4 = scalar_select %p841_p10, 1, 0 }
  0x30   : > { %p140_p12 = scmp.lt.s32.totalorder %s699_s17, 3  ;;  %s851_s8 = scalar_lea.hbm %s983_s2, %s427_s23 }
  0x31   : > { %s702_s10 = smov [#allocation2]   ;;  %s187_s19 = scalar_lea.vmem [#allocation7], %s775_s25 }
  0x32   : > { %p853_p13 = pnand %p423_p5, %p140_p12  ;;  %s857_s11 = sshll.u32 %s702_s10, 4  ;;  %s154_s11 = int_to_ptr.vmem [resolvable:$true] %s857_s11 }
  0x33   : > { %s195_s20 = sshll.u32 %s187_s19, 4  ;;  %s555_s21 = scalar_lea.hbm %s851_s8, 128  ;;  %s196_s20 = int_to_ptr.vmem [resolvable:$true] %s195_s20 }
  0x34   : > { %s994_s9 = scalar_select %p853_p13, 1, 0 }
  0x35   : > { %p556_p0 = scmp.ne.s32.totalorder %s851_s8, %s555_s21  ;;  %s560_s27 = scalar_lea.hbm %s983_s2, 256 }
  0x36   : > { %p561_p4 = scmp.lt.u32.totalorder %s851_s8, %s983_s2  ;;  %p562_p5 = scmp.lt.u32.totalorder %s560_s27, %s555_s21 }
  0x37   : > { %p558_p3 = pnand %p556_p0, %p527_p9  ;;  %p564_p11 = scmp.lt.u32.totalorder %s555_s21, %s851_s8 }
  0x38   : > { %p563_p12 = por %p562_p5, %p561_p4 }
  0x39   : > { %p559_p2 = pneg %p558_p3 }
  0x3a   : > { %p565_p10 = por %p564_p11, %p563_p12 }
  0x3c   : > { %p566_p1 = pnand %p565_p10, %p559_p2 }
  0x3e   : > { %569 = shalt.err (!%p566_p1)
}
  0x3f   : > { %s570_s25 = scalar_lea.vmem %s196_s20, 128  ;;  %s703_s10 = smov [#allocation7]  }
  0x40   : > { %p571_p8 = scmp.ne.s32.totalorder %s196_s20, %s570_s25  ;;  %s575_s19 = sshll.u32 %s703_s10, 4  ;;  %s576_s19 = int_to_ptr.vmem [resolvable:$false] %s575_s19 }
  0x41   : > { %s577_s23 = scalar_lea.vmem %s576_s19, 256  ;;  %p578_p6 = scmp.lt.s32.totalorder %s196_s20, %s576_s19 }
  0x42   : > { %p573_p0 = pnand %p571_p8, %p527_p9  ;;  %p579_p13 = scmp.lt.s32.totalorder %s577_s23, %s570_s25 }
  0x44   : > { %p574_p3 = pneg %p573_p0  ;;  %p580_p4 = por %p579_p13, %p578_p6 }
  0x46   : > { %p581_p5 = pnand %p580_p4, %p574_p3 }
  0x48   : > { %584 = shalt.err (!%p581_p5)
}
  0x49   : > { %460 = dma.hbm_to_vmem [thread:$0]  (!%p784_p7), %s851_s8, 128, %s196_s20, %s791_s5  }
  0x4a   : > { %p995_p9 = scmp.eq.s32.totalorder %s820_s26, 0  ;;  %p996_p11 = scmp.ne.s32.totalorder %s994_s9, 0 }
  0x4b   : > { %s585_s6 = scalar_lea.hbm %s981_s0, 16 }
  0x4c   : > { %p997_p8 = pneg %p996_p11  ;;  %p586_p6 = scmp.ne.s32.totalorder %s981_s0, %s585_s6 }
  0x4d   : > { %p592_p2 = scmp.lt.u32.totalorder %s585_s6, %s981_s0 }
  0x4e   : > { %p888_p10 = pnand %p997_p8, %p995_p9 }
  0x50   : > { %p587_p13 = pneg %p888_p10 }
  0x52   : > { %p588_p7 = pnand %p587_p13, %p586_p6 }
  0x54   : > { %p589_p1 = pneg %p588_p7 }
  0x56   : > { %p594_p12 = pnand %p592_p2, %p589_p1 }
  0x58   : > { %597 = shalt.err (!%p594_p12)
}
  0x59   : > { %s598_s20 = scalar_lea.vmem %s154_s11, 16  ;;  %s605_s25 = scalar_lea.vmem %s154_s11, 32 }
  0x5a   : > { %p599_p0 = scmp.ne.s32.totalorder %s154_s11, %s598_s20  ;;  %p606_p5 = scmp.lt.s32.totalorder %s154_s11, %s154_s11 }
  0x5b   : > { %p607_p9 = scmp.lt.s32.totalorder %s605_s25, %s598_s20 }
  0x5c   : > { %p601_p3 = pnand %p599_p0, %p587_p13 }
  0x5d   : > { %p608_p8 = por %p607_p9, %p606_p5 }
  0x5e   : > { %p602_p4 = pneg %p601_p3 }
  0x60   : > { %p609_p11 = pnand %p608_p8, %p602_p4 }
  0x62   : > { %612 = shalt.err (!%p609_p11)
}
  0x63   : > { %453 = dma.hbm_to_vmem [thread:$0]  (!%p888_p10), %s981_s0, 16, %s154_s11, [#allocation3]  }
  0x64   : > { %p999_p6 = scmp.ne.s32.totalorder %s994_s9, 0 }
  0x65   : > { %p1000_p7 = scmp.eq.s32.totalorder (!%p999_p6), %s820_s26, 0 }
  0x66   : > { %204 = sbr.rel (%p999_p6) target bundleno = 188 (0xbc), region = 32 }
  0x6d   : > { %666 = dma.done.wait (%p1000_p7), [#allocation3], 16   ;;  %p1001_p13 = pmov %p1000_p7 }
  0x6e   : > { %s210_s23 = sand.u32 1, %s820_s26   ;;  %s212_s22 = sand.u32 1, %s683_s13  }
  0x6f   : > { %668 = vsyncadd (%p1001_p13), [#allocation3], 4294967280  ;;  %s918_s21 = sshll.u32 %s212_s22, 3  ;;  %s211_s11 = scalar_lea.sflag [#allocation6], %s210_s23 }
  0x70   : > { %s214_s27 = scalar_lea.vmem [#allocation5], %s918_s21  ;;  %p1002_p11 = scmp.ne.s32.totalorder %s991_s30, 0 }
  0x72   : > { %670 = dma.done.wait (%p1002_p11), %s211_s11, 256  }
  0x73   : > { %672 = vsyncadd (%p1002_p11), %s211_s11, 4294967040  ;;  %v258_v0 = vld [vmem:[%s214_s27] sm:$0xff]  ;;  %s223_s26 = scalar_lea.vmem [#allocation7], %s918_s21  ;;  %v435_v22 = vld [vmem:[#allocation2] ss:$0 sm:$0xff]  ;;  %s437_s30 = sshll.u32 %s691_s15, 7 }
  0x74   : > { %v264_v1 = vand.u32 2147483647, %v258_v0  ;;  %v259_v7 = vld [vmem:[%s223_s26] sm:$0xff]  ;;  %v261_v9 = vmax.f32 %v258_v0, 0.0  ;;  %s250_s9 = scalar_lea.vmem [#allocation8], %s918_s21  ;;  %s931_s5 = scalar_lea.hbm %s984_s3, %s437_s30 }
  0x75   : > { %v262_v10 = vmul.f32 %v259_v7, %v258_v0  ;;  %s309_s6 = sshll.u32 %s250_s9, 4  ;;  %s296_s8 = scalar_lea.sflag [#allocation4], %s212_s22  ;;  %s933_s6 = int_to_ptr.vmem [resolvable:$true] %s309_s6 }
  0x76   : > { %v265_v2 = vsub.f32 0.0, %v264_v1  ;;  %s613_s20 = scalar_lea.vmem %s933_s6, 128  ;;  %p1003_p1 = scmp.ne.s32.totalorder %s992_s28, 0 }
  0x77   : > { %v263_v14 = vsub.f32 %v261_v9, %v262_v10  ;;  %p614_p10 = scmp.ne.s32.totalorder %s933_s6, %s613_s20  ;;  %s704_s15 = smov [#allocation8]  }
  0x78   : > { %v266_v3 = vmul.f32 1.442695, %v265_v2  ;;  %s617_s25 = sshll.u32 %s704_s15, 4  ;;  %s618_s25 = int_to_ptr.vmem [resolvable:$false] %s617_s25 }
  0x79   : > { %p615_p2 = pnand %p614_p10, %p1003_p1  ;;  %s619_s10 = scalar_lea.vmem %s618_s25, 256 }
  0x7a   : > { %519 = vpow2.f32 %v266_v3  ;;  %p620_p0 = scmp.lt.s32.totalorder %s933_s6, %s618_s25  ;;  %p621_p3 = scmp.lt.s32.totalorder %s619_s10, %s613_s20 }
  0x7b   : > { %p616_p12 = pneg %p615_p2 }
  0x7c   : > { %p622_p4 = por %p621_p3, %p620_p0 }
  0x7e   : > { %p623_p5 = pnand %p622_p4, %p616_p12 }
  0x84   : > { %v520_v4 = vpop.eup %519 }
  0x85   : > { %v268_v5 = vadd.f32 1.0, %v520_v4  ;;  %v271_v6 = vmul.f32 -0.5, %v520_v4  ;;  %v274_v11 = vand.u32 2147483647, %v520_v4 }
  0x87   : > { %521 = vlog2.f32 %v268_v5  ;;  %v272_v8 = vadd.f32 1.0, %v271_v6  ;;  %vm275_vm0 = vcmp.lt.f32.partialorder %v274_v11, 0.0004427343 }
  0x89   : > { %v273_v12 = vmul.f32 %v520_v4, %v272_v8 }
  0x91   : > { %v522_v13 = vpop.eup %521 }
  0x92   : > { %v270_v15 = vmul.f32 0.6931472, %v522_v13 }
  0x94   : > { %v276_v16 = vsel %vm275_vm0, %v273_v12, %v270_v15 }
  0x95   : > { %v277_v17 = vadd.f32 %v276_v16, %v263_v14 }
  0x97   : > { %v278_v18 = vsub.f32 0.0, %v277_v17 }
  0x99   : > { %v279_v19 = vmul.f32 1.442695, %v278_v18 }
  0x9b   : > { %523 = vpow2.f32 %v279_v19 }
  0xa5   : > { %v524_v20 = vpop.eup %523 }
  0xa6   : > { %v281_v21 = vsub.f32 1.0, %v524_v20 }
  0xa8   : > { %v282_v23 = vmul.f32 %v281_v21, %v281_v21 }
  0xaa   : > { %v289_v24 = vmul.f32 %v435_v22, %v282_v23 }
  0xac   : > { %v290_v25 = vmul.f32 %v289_v24, %v277_v17 }
  0xae   : > { %294 = vst [vmem:[%s250_s9] sm:$0xff] %v290_v25 }
  0xaf   : > { %626 = shalt.err (!%p623_p5)
}
  0xb0   : > { %s627_s19 = scalar_lea.hbm %s931_s5, 128  ;;  %s631_s21 = scalar_lea.hbm %s984_s3, 256 }
  0xb1   : > { %p628_p9 = scmp.ne.s32.totalorder %s931_s5, %s627_s19  ;;  %p632_p7 = scmp.lt.u32.totalorder %s931_s5, %s984_s3 }
  0xb2   : > { %p633_p13 = scmp.lt.u32.totalorder %s631_s21, %s627_s19  ;;  %p635_p10 = scmp.lt.u32.totalorder %s627_s19, %s931_s5 }
  0xb3   : > { %p629_p8 = pnand %p628_p9, %p1003_p1 }
  0xb4   : > { %p634_p11 = por %p633_p13, %p632_p7 }
  0xb5   : > { %p630_p6 = pneg %p629_p8 }
  0xb6   : > { %p636_p2 = por %p635_p10, %p634_p11 }
  0xb8   : > { %p637_p12 = pnand %p636_p2, %p630_p6 }
  0xba   : > { %640 = shalt.err (!%p637_p12)
}
  0xbb   : > { %448 = dma.vmem_to_hbm [thread:$0]  (%p1003_p1), %s933_s6, 128, %s931_s5, %s296_s8  }
  0xbc PF: > { %s321_s26 = sand.u32 1, %s679_s12   ;;  %p1004_p0 = scmp.ne.s32.totalorder %s993_s4, 0 }
  0xbd   : > { %p1005_p3 = scmp.ge.s32.totalorder %s699_s17, 2  ;;  %s322_s30 = scalar_lea.sflag [#allocation4], %s321_s26 }
  0xbf   : > { %p462_p4 = pnand %p1005_p3, %p1004_p0 }
  0xc1   : > { %674 = dma.done.wait (!%p462_p4), %s322_s30, 128  }
  0xc2   : > { %676 = vsyncadd (!%p462_p4), %s322_s30, 4294967168  ;;  %s20_s17 = sadd.s32 1, %s699_s17   ;;  %s1006_s12 = smov %s683_s13 }
  0xc3   : > { %p17_p5 = scmp.ge.s32.totalorder %s20_s17, 4   ;;  %s1007_s13 = smov %s687_s14 }
  0xc4   : > { %s1008_s14 = smov %s773_s24  ;;  %s1009_s15 = smov %s695_s16 }
  0xc5   : > { %s1010_s16 = smov %s1012_s18  ;;  %19 = sbr.rel (!%p17_p5) target bundleno = 7 (0x7), region = 97 }
  0xcc   :  { %327 = vsyncpa [#allocation3], 1 }
  0xcd   :  { %329 = vsyncpa [#allocation3 + $0x1], 1 }
  0xce   :  { %330 = vsyncpa [#allocation6], 1 }
  0xcf   :  { %332 = vsyncpa [#allocation6 + $0x1], 1 }
  0xd0   :  { %333 = vsyncpa [#allocation4], 1 }
  0xd1   :  { %335 = vsyncpa [#allocation4 + $0x1], 1 }

</bundles_post_ra>
